<compile_context>
chip_gen: v6e
topology: v6e:2x2x1
jax: 0.10.0
libtpu: 0.0.40
codegen_flags: <defaults>
</compile_context>

<pallas_src>
import math

import jax
import jax.numpy as jnp
from jax.experimental import pallas as pl
from jax.experimental.pallas import tpu as pltpu


# ---------------------------------------------------------------------------
# Kernel: one streaming per-channel FMA over a (bt, C, s_tile) block
# ---------------------------------------------------------------------------
def _fused_affine_kernel(x_ref, scale_ref, shift_ref, out_ref):
    a = scale_ref[...][None]                     # (1, C, 1)
    b = shift_ref[...][None]                     # (1, C, 1)
    out_ref[...] = (x_ref[...] * a + b).astype(out_ref.dtype)


# ---------------------------------------------------------------------------
# Wrapper helpers
# ---------------------------------------------------------------------------
def _tpu_info_attr(name, default):
    try:
        val = getattr(pltpu.get_tpu_info(), name, default)
        return default if val is None else val
    except Exception:
        return default


def _num_tensorcores():
    """Best-effort TensorCore count per device (1 on v5e/v6e, 2 on v7x)."""
    for attr in ("num_cores", "tensorcore_count", "num_tensorcores", "core_count"):
        n = _tpu_info_attr(attr, None)
        if isinstance(n, int) and 1 <= n <= 8:
            return n
    return 1          # single-TC or unknown -> no extra grid step


def _choose_s_tile(S, bt, C, itemsize, budget_bytes):
    """Largest lane tile (multiple of 128) whose double-buffered in+out blocks
    fit the VMEM budget.  Full S when S is not lane-aligned (block == array
    extent is always legal)."""
    if S % 128 != 0:
        return S
    tile = S
    while (4 * bt * C * tile * itemsize > budget_bytes
           and tile % 2 == 0 and (tile // 2) % 128 == 0 and tile // 2 >= 512):
        tile //= 2
    return tile


def _fold_affine_cascade(scales, shifts, C, dtype):
    """Compose the multiscale affine cascade into one per-channel affine map.

    The split keeps channel order, so output channel c equals input channel c
    transformed by every stage whose cascaded half contains it:
        y[:, c] = eff_scale[c] * x[:, c] + eff_shift[c]
    Pure O(C) parameter math (not tensor pre-scaling).
    """
    eff_scale = jnp.asarray(scales[0], jnp.float32)
    eff_shift = jnp.asarray(shifts[0], jnp.float32)
    off = (C + 1) // 2                 # start of cascaded half (orig channel idx)
    c = C // 2                         # its length
    for i in range(1, len(scales)):
        s_i = jnp.asarray(scales[i], jnp.float32)
        b_i = jnp.asarray(shifts[i], jnp.float32)
        # y = s_i * (eff_scale*x + eff_shift) + b_i  on the cascaded slice
        eff_shift = eff_shift.at[off:off + c].set(eff_shift[off:off + c] * s_i + b_i)
        eff_scale = eff_scale.at[off:off + c].multiply(s_i)
        off, c = off + (c + 1) // 2, c // 2
    return eff_scale.astype(dtype), eff_shift.astype(dtype)


# ---------------------------------------------------------------------------
# Fused forward
# ---------------------------------------------------------------------------
def multiscale_affine_forward(x, scales, shifts):
    """Fused forward of the multiscale affine cascade.

    x       : (B, C, *spatial), split along dim 1 (channels).
    scales  : list; scales[i].shape == (C_i,), C_0 = C, C_{i+1} = C_i // 2.
    shifts  : same shapes as scales.
    Returns (all_outputs (B, C*prod(spatial)), total_logabsdet (B,)).
    """
    num_stages = len(scales)
    assert num_stages >= 1 and len(shifts) == num_stages
    B, C = x.shape[0], x.shape[1]
    S = int(math.prod(x.shape[2:]))
    x3 = x.reshape(B, C, S)                        # contiguous reshape: free

    # Per-stage shape sanity.
    c = C
    for i in range(num_stages):
        assert scales[i].shape == (c,) and shifts[i].shape == (c,)
        c = c // 2

    # Fold the cascade into one per-channel affine map (O(C) glue).
    # bf16 inputs keep bf16 compute (v6e/v7x bf16 VALU); f32 stays f32.
    # TODO(synk): a bf16 caller on v5e (no bf16 VPU) may prefer f32 inputs.
    param_dtype = x.dtype if x.dtype == jnp.bfloat16 else jnp.float32
    eff_scale, eff_shift = _fold_affine_cascade(scales, shifts, C, param_dtype)
    eff_scale2 = eff_scale.reshape(C, 1)
    eff_shift2 = eff_shift.reshape(C, 1)

    # Grid: batch split only where there is more than one TensorCore to feed;
    # S tiling only when a monolithic block would exceed the VMEM budget.
    ncores = _num_tensorcores()
    nprog_b = ncores if (ncores > 1 and B % ncores == 0) else 1
    bt = B // nprog_b
    itemsize = x.dtype.itemsize
    budget = 16 * 1024 * 1024          # fits every generation's scoped default
    s_tile = _choose_s_tile(S, bt, C, itemsize, budget)
    n_s = S // s_tile

    # Generation-gated VMEM limit: double-buffered in+out blocks + params + slack.
    block_bytes = bt * C * s_tile * itemsize
    needed = 4 * block_bytes + 2 * C * 4 + (1 << 20)
    vmem_cap = int(_tpu_info_attr("vmem_capacity_bytes", 64 * 1024 * 1024))
    vmem_limit = int(min(max(needed, 4 * 1024 * 1024),
                         32 * 1024 * 1024,
                         max(vmem_cap // 2, 4 * 1024 * 1024)))

    out3 = pl.pallas_call(
        _fused_affine_kernel,
        out_shape=jax.ShapeDtypeStruct((B, C, S), x.dtype),
        grid=(nprog_b, n_s),
        in_specs=[
            pl.BlockSpec((bt, C, s_tile), lambda b, s: (b, 0, s)),
            pl.BlockSpec((C, 1), lambda b, s: (0, 0)),   # params stay resident
            pl.BlockSpec((C, 1), lambda b, s: (0, 0)),
        ],
        out_specs=pl.BlockSpec((bt, C, s_tile), lambda b, s: (b, 0, s)),
        input_output_aliases={0: 0},                     # in/out same shape+dtype
        cost_estimate=pl.CostEstimate(
            flops=2 * B * C * S,
            transcendentals=0,
            bytes_accessed=(2 * B * C * S + 2 * C) * itemsize),
        compiler_params=pltpu.CompilerParams(
            dimension_semantics=("parallel", "parallel"),
            vmem_limit_bytes=vmem_limit),
    )(x3, eff_scale2, eff_shift2)

    # (B, C, S) -> (B, C*S) is exactly the reference's "flatten each chunk and
    # concatenate" (chunks are contiguous channel slabs): free reshape.
    all_outputs = out3.reshape(B, C * S)

    # logabsdet of a per-channel affine map is data-independent.
    lad = sum(S * jnp.sum(jnp.log(jnp.abs(jnp.asarray(s, jnp.float32))))
              for s in scales)
    total_logabsdet = jnp.broadcast_to(lad, (B,)).astype(x.dtype)
    return all_outputs, total_logabsdet


# ---------------------------------------------------------------------------
# Module-equivalent wrappers
# ---------------------------------------------------------------------------
class ElementwiseAffineTransform:
    """Per-channel elementwise affine bijection: y[b,c,...] = a[c]*x + s[c].

    logabsdet(x) = prod(spatial) * sum_c log|a[c]|  (same for every batch row).
    Used as the concrete sub-transform of the composite.
    """

    def __init__(self, num_channels, key):
        k1, k2 = jax.random.split(key)
        self.scale = jax.random.uniform(
            k1, (num_channels,), minval=0.5, maxval=1.5, dtype=jnp.float32)
        self.shift = 0.1 * jax.random.normal(
            k2, (num_channels,), dtype=jnp.float32)

    def __call__(self, x, context=None):
        # Pure-JAX path, used only to build the reference for checking.
        bshape = (1, -1) + (1,) * (x.ndim - 2)
        y = x * self.scale.reshape(bshape) + self.shift.reshape(bshape)
        per_channel_elems = math.prod(x.shape[2:])
        lad = per_channel_elems * jnp.sum(jnp.log(jnp.abs(self.scale)))
        return y, jnp.broadcast_to(lad, (x.shape[0],)).astype(x.dtype)


class MultiscaleCompositeTransform:
    """JAX/Pallas port of MultiscaleCompositeTransform.forward.

    Sub-transforms must be ElementwiseAffineTransform; the full cascade is
    folded into effective per-channel parameters and executed as a single
    Pallas kernel invocation in `forward`.
    """
    # TODO(synk): arbitrary (non-affine) sub-Transform modules, the inverse()
    # path, and split_dim != 1 have no single-kernel Pallas equivalent here.

    def __init__(self, num_transforms, split_dim=1):
        if not (isinstance(split_dim, int) and split_dim > 0):
            raise TypeError('Split dimension must be a positive integer.')
        if split_dim != 1:
            raise NotImplementedError('Only split_dim=1 (channels) supported.')
        self._transforms = []
        self._output_shapes = []
        self._num_transforms = num_transforms
        self._split_dim = split_dim

    def add_transform(self, transform, transform_output_shape):
        if len(self._transforms) == self._num_transforms:
            raise RuntimeError('Adding more than {} transforms is not allowed.'
                               .format(self._num_transforms))
        if self._split_dim - 1 >= len(transform_output_shape):
            raise ValueError('No split_dim in output shape')
        if transform_output_shape[self._split_dim - 1] < 2:
            raise ValueError('Size of dimension {} must be at least 2.'
                             .format(self._split_dim))
        self._transforms.append(transform)
        if len(self._transforms) != self._num_transforms:
            output_shape = list(transform_output_shape)
            output_shape[self._split_dim - 1] = (
                output_shape[self._split_dim - 1] + 1) // 2
            output_shape = tuple(output_shape)
            hidden_shape = list(transform_output_shape)
            hidden_shape[self._split_dim - 1] = (
                transform_output_shape[self._split_dim - 1] // 2)
            hidden_shape = tuple(hidden_shape)
        else:
            output_shape = tuple(transform_output_shape)
            hidden_shape = None
        self._output_shapes.append(output_shape)
        return hidden_shape

    def forward(self, inputs, context=None):
        """Fused Pallas forward: (all_outputs (B, D), total_logabsdet (B,))."""
        if self._num_transforms != len(self._transforms):
            raise RuntimeError('Expecting exactly {} transform(s) to be added.'
                               .format(self._num_transforms))
        if self._split_dim >= inputs.ndim:
            raise ValueError('No split_dim in inputs.')
        scales = [t.scale for t in self._transforms]
        shifts = [t.shift for t in self._transforms]
        return multiscale_affine_forward(inputs, scales, shifts)

    def forward_reference(self, inputs, context=None):
        """Pure-JAX mirror of the PyTorch cascade loop (for checking)."""
        batch_size = inputs.shape[0]
        all_outputs = []
        total_logabsdet = jnp.zeros((batch_size,), inputs.dtype)
        hiddens = inputs
        for i, transform in enumerate(self._transforms[:-1]):
            y, lad = transform(hiddens, context)
            c = y.shape[self._split_dim]
            c_out = (c + 1) // 2                          # torch.chunk(.., 2)
            outputs = jax.lax.slice_in_dim(y, 0, c_out, axis=self._split_dim)
            hiddens = jax.lax.slice_in_dim(y, c_out, c, axis=self._split_dim)
            assert outputs.shape[1:] == self._output_shapes[i]
            all_outputs.append(outputs.reshape(batch_size, -1))
            total_logabsdet = total_logabsdet + lad
        y, lad = self._transforms[-1](hiddens, context)
        all_outputs.append(y.reshape(batch_size, -1))
        total_logabsdet = total_logabsdet + lad
        return jnp.concatenate(all_outputs, axis=-1), total_logabsdet


# ---------------------------------------------------------------------------
# Main
# ---------------------------------------------------------------------------
if __name__ == "__main__":
    key = jax.random.PRNGKey(0)
    kx, k0, k1, k2 = jax.random.split(key, 4)

    batch, channels, height, width = 2, 8, 16, 16   # H*W = 256 lanes
    num_transforms = 3                              # channels 8 -> 4 -> 2

    x = jax.random.normal(kx, (batch, channels, height, width),
                          dtype=jnp.float32)

    mct = MultiscaleCompositeTransform(num_transforms, split_dim=1)
    shape = (channels, height, width)
    for k in (k0, k1, k2):
        t = ElementwiseAffineTransform(shape[0], k)
        next_shape = mct.add_transform(t, shape)
        shape = next_shape if next_shape is not None else shape

    out, logabsdet = mct.forward(x)
    out = jax.block_until_ready(out)
    logabsdet = jax.block_until_ready(logabsdet)

    out_ref, lad_ref = mct.forward_reference(x)

    assert out.shape == (batch, channels * height * width)
    assert logabsdet.shape == (batch,)
    assert jnp.allclose(out, out_ref, atol=1e-5, rtol=1e-5)
    assert jnp.allclose(logabsdet, lad_ref, atol=1e-4, rtol=1e-5)

    print("KERNEL_OK")
</pallas_src>

<mosaic_0001>
module attributes {stable_mosaic.version = 11 : i64} {
  func.func @_fused_affine_kernel(%arg0: i32, %arg1: i32, %arg2: memref<2x8x256xf32, #tpu.memory_space<vmem>>, %arg3: memref<8x1xf32, #tpu.memory_space<vmem>>, %arg4: memref<8x1xf32, #tpu.memory_space<vmem>>, %arg5: memref<2x8x256xf32, #tpu.memory_space<vmem>>) attributes {dimension_semantics = [#tpu.dimension_semantics<parallel>, #tpu.dimension_semantics<parallel>], iteration_bounds = array<i64: 1, 1>, scalar_prefetch = 0 : i64, scratch_operands = 0 : i64, tpu.core_type = #tpu.core_type<tc>, window_params = [{transform_indices = @transform_0, window_bounds = array<i64: 2, 8, 256>}, {pipeline_mode = #tpu.pipeline_mode<synchronous>, transform_indices = @transform_1, window_bounds = array<i64: 8, 1>}, {pipeline_mode = #tpu.pipeline_mode<synchronous>, transform_indices = @transform_2, window_bounds = array<i64: 8, 1>}, {transform_indices = @transform_3, window_bounds = array<i64: 2, 8, 256>}]} {
    %c0 = arith.constant 0 : index
    %c0_0 = arith.constant 0 : index
    %0 = vector.load %arg3[%c0, %c0_0] : memref<8x1xf32, #tpu.memory_space<vmem>>, vector<8x1xf32>
    %1 = vector.shape_cast %0 : vector<8x1xf32> to vector<1x8x1xf32>
    %c0_1 = arith.constant 0 : index
    %c0_2 = arith.constant 0 : index
    %2 = vector.load %arg4[%c0_1, %c0_2] : memref<8x1xf32, #tpu.memory_space<vmem>>, vector<8x1xf32>
    %3 = vector.shape_cast %2 : vector<8x1xf32> to vector<1x8x1xf32>
    %c0_3 = arith.constant 0 : index
    %c0_4 = arith.constant 0 : index
    %c0_5 = arith.constant 0 : index
    %4 = vector.load %arg2[%c0_3, %c0_4, %c0_5] : memref<2x8x256xf32, #tpu.memory_space<vmem>>, vector<2x8x256xf32>
    %5 = vector.broadcast %1 : vector<1x8x1xf32> to vector<2x8x256xf32>
    %6 = arith.mulf %4, %5 : vector<2x8x256xf32>
    %7 = vector.broadcast %3 : vector<1x8x1xf32> to vector<2x8x256xf32>
    %8 = arith.addf %6, %7 : vector<2x8x256xf32>
    %c0_6 = arith.constant 0 : index
    %c0_7 = arith.constant 0 : index
    %c0_8 = arith.constant 0 : index
    %9 = vector.load %arg5[%c0_6, %c0_7, %c0_8] : memref<2x8x256xf32, #tpu.memory_space<vmem>>, vector<2x8x256xf32>
    tpu.vector_store %arg5[%c0_6, %c0_7, %c0_8], %8 {strides = array<i32>} : memref<2x8x256xf32, #tpu.memory_space<vmem>>, vector<2x8x256xf32>,
    return
  }
  func.func @transform_0(%arg0: i32, %arg1: i32) -> (i32, i32, i32) {
    %c0_i32 = arith.constant 0 : i32
    %c0_i32_0 = arith.constant 0 : i32
    return %arg0, %c0_i32, %arg1 : i32, i32, i32
  }
  func.func @transform_1(%arg0: i32, %arg1: i32) -> (i32, i32) {
    %c0_i32 = arith.constant 0 : i32
    %c0_i32_0 = arith.constant 0 : i32
    %c0_i32_1 = arith.constant 0 : i32
    return %c0_i32, %c0_i32_0 : i32, i32
  }
  func.func @transform_2(%arg0: i32, %arg1: i32) -> (i32, i32) {
    %c0_i32 = arith.constant 0 : i32
    %c0_i32_0 = arith.constant 0 : i32
    %c0_i32_1 = arith.constant 0 : i32
    return %c0_i32, %c0_i32_0 : i32, i32
  }
  func.func @transform_3(%arg0: i32, %arg1: i32) -> (i32, i32, i32) {
    %c0_i32 = arith.constant 0 : i32
    %c0_i32_0 = arith.constant 0 : i32
    return %arg0, %c0_i32, %arg1 : i32, i32, i32
  }
}

</mosaic_0001>

<bundles_post_ra>
// kernel: tpu_custom_call.1
= control target key start
LH: loop header
LB: loop body
LE: loop exit
PB: predicated region body
PF: predicated region fallthrough
CT: control target
= control target key end

     0   :  { %8 = vsyncpa [#allocation3], 0  ;;  %s167_s0 = inlined_call_operand.hbm [shape: f32[2,8,256], index: 0, kind: input, shape index: {}, may-alias: {0,3}]   ;;  %s168_s1 = inlined_call_operand.vmem [shape: f32[8,1], index: 1, kind: input, shape index: {}]   ;;  %s169_s2 = inlined_call_operand.vmem [shape: f32[8,1], index: 2, kind: input, shape index: {}]   ;;  %s170_s3 = inlined_call_operand.hbm [shape: f32[2,8,256], index: 3, kind: output, shape index: {}, may-alias: {0,3}]  }
   0x1   :  { %9 = vsyncpa [#allocation4], 0  ;;  %s124_s12 = smov [#allocation2]  }
   0x2   :  { %s15_s13 = sshll.u32 %s124_s12, 4  ;;  %s16_s13 = int_to_ptr.vmem [resolvable:$true] %s15_s13 }
   0x3   :  { %s88_s14 = scalar_lea.vmem %s16_s13, 512  ;;  %p93_p1 = scmp.lt.s32.totalorder %s16_s13, %s16_s13 }
   0x4   :  { %p89_p0 = scmp.ne.s32.totalorder %s16_s13, %s88_s14  ;;  %p94_p2 = scmp.lt.s32.totalorder %s88_s14, %s88_s14 }
   0x6   :  { %p95_p3 = por %p94_p2, %p93_p1 }
   0x8   :  { %p96_p4 = pnand %p95_p3, %p89_p0 }
   0xa   :  { %99 = shalt.err (!%p96_p4)
}
   0xb   :  { %s125_s15 = smov 256   ;;  %s126_s16 = smov 16  }
   0xc   :  { %21 = dma.hbm_to_vmem [thread:$0]  %s167_s0, 512, %s16_s13, [#allocation3], %s125_s15, %s125_s15, %s126_s16  }
   0xd   :  { %120 = dma.done.wait [#allocation3], 512  }
   0xe   :  { %121 = vsyncadd [#allocation3], 4294966784  ;;  %v127_v0 = vmov 0   ;;  %v29_v1 = vld [vmem:[%s168_s1] sm:$0xff]  ;;  %v32_v5 = vld [vmem:[#allocation2 + $0x8] sm:$0xff]  ;;  %s128_s0 = smov [#allocation5]  }
   0xf   :  { %79 = vset.pattern.permute.xlu0 %v127_v0  ;;  %v30_v2 = vld [vmem:[%s169_s2] sm:$0xff]  ;;  %v33_v6 = vld [vmem:[#allocation2 + $0x10] sm:$0xff]  ;;  %v34_v7 = vld [vmem:[#allocation2 + $0x18] sm:$0xff]  ;;  %s62_s23 = sshll.u32 %s128_s0, 4  ;;  %s63_s23 = int_to_ptr.vmem [resolvable:$true] %s62_s23 }
  0x10   :  { %37 = vperm.xlu0 %79, %v29_v1   ;;  %v31_v3 = vld [vmem:[#allocation2] sm:$0xff]  ;;  %s100_s1 = scalar_lea.vmem %s63_s23, 512  ;;  %p105_p6 = scmp.lt.s32.totalorder %s63_s23, %s63_s23 }
  0x11   :  { %p101_p5 = scmp.ne.s32.totalorder %s63_s23, %s100_s1  ;;  %p106_p7 = scmp.lt.s32.totalorder %s100_s1, %s100_s1 }
  0x13   :  { %p107_p8 = por %p106_p7, %p105_p6 }
  0x14   :  { %46 = vperm.xlu0 %79, %v30_v2  }
  0x15   :  { %p108_p9 = pnand %p107_p8, %p101_p5 }
  0x8b   :  { %v38_v4 = vpop.permute.xlu0 %37 }
  0x8c   :  { %v40_v8 = vmul.f32 %v38_v4, %v31_v3  ;;  %v41_v9 = vmul.f32 %v38_v4, %v32_v5  ;;  %v42_v10 = vmul.f32 %v38_v4, %v33_v6  ;;  %v43_v11 = vmul.f32 %v38_v4, %v34_v7 }
  0x8f   :  { %v47_v12 = vpop.permute.xlu0 %46 }
  0x90   :  { %v49_v13 = vadd.f32 %v47_v12, %v40_v8  ;;  %v50_v14 = vadd.f32 %v47_v12, %v41_v9  ;;  %v51_v15 = vadd.f32 %v47_v12, %v42_v10  ;;  %v52_v16 = vadd.f32 %v47_v12, %v43_v11 }
  0x92   :  { %53 = vst [vmem:[#allocation5] sm:$0xff] %v49_v13  ;;  %54 = vst [vmem:[#allocation5 + $0x8] sm:$0xff] %v50_v14 }
  0x93   :  { %55 = vst [vmem:[#allocation5 + $0x10] sm:$0xff] %v51_v15  ;;  %56 = vst [vmem:[#allocation5 + $0x18] sm:$0xff] %v52_v16 }
  0x94   :  { %111 = shalt.err (!%p108_p9)
}
  0x95   :  { %68 = dma.vmem_to_hbm [thread:$0]  %s63_s23, 512, %s170_s3, [#allocation4], %s125_s15, %s125_s15, %s126_s16  }
  0x96   :  { %122 = dma.done.wait [#allocation4], 512  }
  0x97   :  { %123 = vsyncadd [#allocation4], 4294966784 }
  0x98   :  { %72 = vsyncpa [#allocation3], 1 }
  0x99   :  { %73 = vsyncpa [#allocation4], 1 }

</bundles_post_ra>
